<compile_context>
chip_gen: v5e
topology: v5e:2x2
jax: 0.10.0
libtpu: 0.0.40
codegen_flags: <defaults>
</compile_context>

<pallas_src>
import jax
import jax.numpy as jnp
from jax.experimental import pallas as pl
from jax.experimental.pallas import tpu as pltpu

LN_EPS = 1e-5  # PyTorch nn.LayerNorm default


# --------------------------------------------------------------------------------------
# Kernel math
# --------------------------------------------------------------------------------------
def _layer_norm(v, gamma, beta):
    """LayerNorm over the last dim, f32 math, centered variance (tile stays in VMEM,
    so this is still a single HBM read)."""
    inv_d = 1.0 / v.shape[-1]
    mean = jnp.sum(v, axis=-1, keepdims=True) * inv_d
    xc = v - mean
    var = jnp.sum(xc * xc, axis=-1, keepdims=True) * inv_d
    return xc * jax.lax.rsqrt(var + LN_EPS) * gamma + beta


def _mlp(v, w1, b1, w2):
    """fc1(+bias) -> ReLU -> fc2 (no bias); MXU operands in the weight dtype (bf16 or f32),
    f32 accumulation."""
    h = jnp.dot(v.astype(w1.dtype), w1, preferred_element_type=jnp.float32) + b1
    h = jnp.maximum(h, 0.0)
    return jnp.dot(h.astype(w2.dtype), w2, preferred_element_type=jnp.float32)


def _ffb_prenorm_kernel(x_ref, gamma_ref, beta_ref, w1_ref, b1_ref, w2_ref, o_ref):
    x = x_ref[...].astype(jnp.float32)                      # (tm, D)
    z = _layer_norm(x, gamma_ref[...], beta_ref[...])
    y = _mlp(z, w1_ref[...], b1_ref[...], w2_ref[...])
    o_ref[...] = (x + y).astype(o_ref.dtype)


def _ffb_postnorm_kernel(x_ref, gamma_ref, beta_ref, w1_ref, b1_ref, w2_ref, o_ref):
    x = x_ref[...].astype(jnp.float32)                      # (tm, D)
    y = _mlp(x, w1_ref[...], b1_ref[...], w2_ref[...])
    r = x + y
    o_ref[...] = _layer_norm(r, gamma_ref[...], beta_ref[...]).astype(o_ref.dtype)


# --------------------------------------------------------------------------------------
# Tiling / VMEM budgeting
# --------------------------------------------------------------------------------------
def _vmem_estimate_bytes(tm, d, m, x_itemsize=4, w_itemsize=2, weight_buffers=1):
    io = 2 * 2 * tm * d * x_itemsize                       # x + out tiles, double-buffered
    weights = weight_buffers * (2 * d * m * w_itemsize + (2 * d + m) * 4)
    intermediates = tm * (12 * d + 8 * m)                   # z/h/y f32 + bf16 copies (rough)
    return io + weights + intermediates


def _choose_tm(n_tokens, d, m, *, target_tile_bytes=2 << 20, min_grid_steps=2,
               vmem_budget_bytes=28 << 20):
    """Bytes-based token-tile size: ~target_tile_bytes of activations per tile, >= min_grid_steps
    grid iterations when N allows (pipeline overlap + both v7x TensorCores get work), shrunk if
    the VMEM estimate would exceed the budget."""
    bytes_per_row = 4 * d
    tm = max(8, target_tile_bytes // bytes_per_row)
    tm = min(tm, pl.cdiv(n_tokens, min_grid_steps))
    tm = max(8, (tm // 8) * 8)
    while tm > 8 and _vmem_estimate_bytes(tm, d, m) > vmem_budget_bytes:
        tm = max(8, ((tm // 2) // 8) * 8)
    return tm


# --------------------------------------------------------------------------------------
# Wrapper
# --------------------------------------------------------------------------------------
def feed_forward_block(x, params, *, norm_type="prenorm", tm=None,
                       use_pallas=None, use_bf16=True, single_buffer_weights=True):
    """x: (B, L, D).  params: gamma/beta (1,D), w1 (D,M), b1 (1,M), w2 (M,D)."""
    B, L, D = x.shape
    N = B * L
    M = params["w1"].shape[1]
    act_bytes = N * D * x.dtype.itemsize

    if use_pallas is None:
        # Byte-based threshold: below a few MiB of activations the fused XLA path beats
        # pallas_call launch + per-step overhead.
        use_pallas = act_bytes >= (4 << 20)
    if not use_pallas:
        return _reference(x, params, norm_type=norm_type, bf16_matmul=use_bf16)

    wdtype = jnp.bfloat16 if use_bf16 else jnp.float32
    w1 = params["w1"].astype(wdtype)
    w2 = params["w2"].astype(wdtype)
    gamma = params["gamma"].astype(jnp.float32)
    beta = params["beta"].astype(jnp.float32)
    b1 = params["b1"].astype(jnp.float32)

    if tm is None:
        tm = _choose_tm(N, D, M)
    tm = max(8, (tm // 8) * 8)
    tm = min(tm, ((N + 7) // 8) * 8)          # no point in a tile larger than the token count
    grid = (pl.cdiv(N, tm),)

    x2 = x.reshape(N, D)
    kernel = _ffb_prenorm_kernel if norm_type == "prenorm" else _ffb_postnorm_kernel

    weight_buffers = 1 if single_buffer_weights else 2
    vmem_limit = int(min(
        48 << 20,
        max(16 << 20,
            int(1.5 * _vmem_estimate_bytes(tm, D, M, x.dtype.itemsize,
                                           w1.dtype.itemsize, weight_buffers)))))
    cparams = pltpu.CompilerParams(
        dimension_semantics=("parallel",),
        vmem_limit_bytes=vmem_limit,
    )
    cost = pl.CostEstimate(
        flops=4 * N * D * M,                                          # two matmuls
        transcendentals=N,                                            # rsqrt per row
        bytes_accessed=2 * act_bytes + 2 * D * M * w1.dtype.itemsize + (2 * D + M) * 4,
    )

    def _build(wbufs):
        def const_spec(shape):
            kwargs = {}
            if wbufs == 1:
                # constant block index -> one buffer is enough; reclaim VMEM for the token tile
                kwargs["pipeline_mode"] = pl.Buffered(1)
            return pl.BlockSpec(shape, lambda i: (0, 0), **kwargs)

        return pl.pallas_call(
            kernel,
            out_shape=jax.ShapeDtypeStruct((N, D), x.dtype),
            grid=grid,
            in_specs=[
                pl.BlockSpec((tm, D), lambda i: (i, 0)),   # x tile (tokens-major)
                const_spec((1, D)),                        # gamma
                const_spec((1, D)),                        # beta
                const_spec((D, M)),                        # W1 (embed -> mlp), pre-transposed
                const_spec((1, M)),                        # b1
                const_spec((M, D)),                        # W2 (mlp -> embed), pre-transposed
            ],
            out_specs=pl.BlockSpec((tm, D), lambda i: (i, 0)),
            compiler_params=cparams,
            cost_estimate=cost,
        )

    try:
        out2 = _build(weight_buffers)(x2, gamma, beta, w1, b1, w2)
    except Exception:
        if weight_buffers == 1:
            # Buffered(1) not supported on this jax/Mosaic version -> default double buffering.
            out2 = _build(2)(x2, gamma, beta, w1, b1, w2)
        else:
            raise

    return out2.reshape(B, L, D)


# --------------------------------------------------------------------------------------
# Params / reference
# --------------------------------------------------------------------------------------
def init_params(key, embed_dim, mlp_dim, dtype=jnp.float32):
    """Synthetic init mirroring the PyTorch module's shapes (weights stored pre-transposed)."""
    k1, k2, k3 = jax.random.split(key, 3)

    def xavier_uniform(k, fan_out, fan_in):
        limit = (6.0 / (fan_in + fan_out)) ** 0.5
        return jax.random.uniform(k, (fan_out, fan_in), dtype, -limit, limit)

    w1_pt = xavier_uniform(k1, mlp_dim, embed_dim)   # torch fc1.weight (M, D)
    w2_pt = xavier_uniform(k2, embed_dim, mlp_dim)   # torch fc2.weight (D, M)
    b_lim = 1.0 / (embed_dim ** 0.5)
    b1 = jax.random.uniform(k3, (1, mlp_dim), dtype, -b_lim, b_lim)

    return {
        "gamma": jnp.ones((1, embed_dim), dtype),
        "beta": jnp.zeros((1, embed_dim), dtype),
        "w1": w1_pt.T,   # (D, M)
        "b1": b1,        # (1, M)
        "w2": w2_pt.T,   # (M, D)
    }


def _reference(x, params, norm_type="prenorm", bf16_matmul=False):
    """Pure-JAX reference of the PyTorch forward (dropout_rate=0)."""
    gamma, beta = params["gamma"][0], params["beta"][0]
    w1, b1, w2 = params["w1"], params["b1"][0], params["w2"]
    xf = x.astype(jnp.float32)

    def ln(v):
        mean = jnp.mean(v, axis=-1, keepdims=True)
        var = jnp.mean((v - mean) ** 2, axis=-1, keepdims=True)
        return (v - mean) / jnp.sqrt(var + LN_EPS) * gamma + beta

    def mlp(v):
        if bf16_matmul:
            a, b = w1.astype(jnp.bfloat16), w2.astype(jnp.bfloat16)
            h = jnp.dot(v.astype(jnp.bfloat16), a, preferred_element_type=jnp.float32) + b1
            h = jnp.maximum(h, 0.0)
            return jnp.dot(h.astype(jnp.bfloat16), b, preferred_element_type=jnp.float32)
        h = jnp.maximum(v @ w1 + b1, 0.0)
        return h @ w2

    if norm_type == "prenorm":
        out = xf + mlp(ln(xf))
    else:
        out = ln(xf + mlp(xf))
    return out.astype(x.dtype)


# --------------------------------------------------------------------------------------
# Demo / checks
# --------------------------------------------------------------------------------------
if __name__ == "__main__":
    # config: embed_dim=32, mlp_dim=64, dropout_rate=0.0, transformer_norm_type='prenorm'
    B, L, D, M = 2, 8, 32, 64
    key = jax.random.PRNGKey(0)
    kx, kp, kx2, kx3 = jax.random.split(key, 4)

    x = jax.random.normal(kx, (B, L, D), jnp.float32)
    params = init_params(kp, embed_dim=D, mlp_dim=M)

    # 1) exact f32 path vs f32 reference (prenorm + postnorm); Pallas forced at small N.
    out = jax.block_until_ready(
        feed_forward_block(x, params, norm_type="prenorm", use_pallas=True, use_bf16=False))
    ref = _reference(x, params, norm_type="prenorm", bf16_matmul=False)
    assert out.shape == (B, L, D)
    assert jnp.allclose(out, ref, atol=1e-4, rtol=1e-4), "prenorm f32 mismatch vs reference"

    out_pn = jax.block_until_ready(
        feed_forward_block(x, params, norm_type="postnorm", use_pallas=True, use_bf16=False))
    ref_pn = _reference(x, params, norm_type="postnorm", bf16_matmul=False)
    assert jnp.allclose(out_pn, ref_pn, atol=1e-4, rtol=1e-4), "postnorm f32 mismatch vs reference"

    # 2) bf16-MXU path vs matched bf16 reference (f32 accumulation in both).
    out_bf = jax.block_until_ready(
        feed_forward_block(x, params, norm_type="prenorm", use_pallas=True, use_bf16=True))
    ref_bf = _reference(x, params, norm_type="prenorm", bf16_matmul=True)
    assert jnp.allclose(out_bf, ref_bf, atol=5e-3, rtol=5e-3), "prenorm bf16 mismatch vs reference"

    # 3) boundary-block path: N not divisible by tm, no pad / slice round trip.
    xb = jax.random.normal(kx3, (3, 5, D), jnp.float32)     # N = 15, tm = 8 -> partial last block
    out_b = jax.block_until_ready(
        feed_forward_block(xb, params, norm_type="prenorm", tm=8,
                           use_pallas=True, use_bf16=False))
    ref_b = _reference(xb, params, norm_type="prenorm", bf16_matmul=False)
    assert out_b.shape == xb.shape
    assert jnp.allclose(out_b, ref_b, atol=1e-4, rtol=1e-4), "boundary-block mismatch vs reference"

    # 4) larger token count: N = 4096 -> bytes-based tile (tm = 2048), grid = 2 steps.
    B2, L2 = 8, 512
    x_big = jax.random.normal(kx2, (B2, L2, D), jnp.float32)
    out_big = jax.block_until_ready(
        feed_forward_block(x_big, params, norm_type="prenorm", use_pallas=True, use_bf16=True))
    ref_big = _reference(x_big, params, norm_type="prenorm", bf16_matmul=True)
    assert out_big.shape == (B2, L2, D)
    assert jnp.allclose(out_big, ref_big, atol=5e-3, rtol=5e-3), "large-N bf16 mismatch vs reference"

    # 5) bf16 activations in/out (halves activation HBM traffic; LN math stays f32 in-kernel).
    x_bf = x_big.astype(jnp.bfloat16)
    out_act_bf = jax.block_until_ready(
        feed_forward_block(x_bf, params, norm_type="prenorm", use_pallas=True, use_bf16=True))
    assert out_act_bf.dtype == jnp.bfloat16 and out_act_bf.shape == (B2, L2, D)
    assert jnp.allclose(out_act_bf.astype(jnp.float32), ref_big, atol=1e-1, rtol=5e-2), \
        "bf16-activation mismatch vs reference"

    print("KERNEL_OK")
</pallas_src>

<mosaic_0001>
module attributes {stable_mosaic.version = 11 : i64} {
  func.func @_ffb_prenorm_kernel(%arg0: i32, %arg1: memref<8x32xf32, #tpu.memory_space<vmem>>, %arg2: memref<1x32xf32, #tpu.memory_space<vmem>>, %arg3: memref<1x32xf32, #tpu.memory_space<vmem>>, %arg4: memref<32x64xf32, #tpu.memory_space<vmem>>, %arg5: memref<1x64xf32, #tpu.memory_space<vmem>>, %arg6: memref<64x32xf32, #tpu.memory_space<vmem>>, %arg7: memref<8x32xf32, #tpu.memory_space<vmem>>) attributes {dimension_semantics = [#tpu.dimension_semantics<parallel>], iteration_bounds = array<i64: 2>, scalar_prefetch = 0 : i64, scratch_operands = 0 : i64, tpu.core_type = #tpu.core_type<tc>, window_params = [{transform_indices = @transform_0, window_bounds = array<i64: 8, 32>}, {pipeline_mode = #tpu.pipeline_mode<synchronous>, transform_indices = @transform_1, window_bounds = array<i64: 1, 32>}, {pipeline_mode = #tpu.pipeline_mode<synchronous>, transform_indices = @transform_2, window_bounds = array<i64: 1, 32>}, {pipeline_mode = #tpu.pipeline_mode<synchronous>, transform_indices = @transform_3, window_bounds = array<i64: 32, 64>}, {pipeline_mode = #tpu.pipeline_mode<synchronous>, transform_indices = @transform_4, window_bounds = array<i64: 1, 64>}, {pipeline_mode = #tpu.pipeline_mode<synchronous>, transform_indices = @transform_5, window_bounds = array<i64: 64, 32>}, {transform_indices = @transform_6, window_bounds = array<i64: 8, 32>}]} {
    %c0 = arith.constant 0 : index
    %c0_0 = arith.constant 0 : index
    %0 = vector.load %arg1[%c0, %c0_0] : memref<8x32xf32, #tpu.memory_space<vmem>>, vector<8x32xf32>
    %c0_1 = arith.constant 0 : index
    %c0_2 = arith.constant 0 : index
    %1 = vector.load %arg2[%c0_1, %c0_2] : memref<1x32xf32, #tpu.memory_space<vmem>>, vector<1x32xf32>
    %c0_3 = arith.constant 0 : index
    %c0_4 = arith.constant 0 : index
    %2 = vector.load %arg3[%c0_3, %c0_4] : memref<1x32xf32, #tpu.memory_space<vmem>>, vector<1x32xf32>
    %cst = arith.constant dense<0.000000e+00> : vector<8xf32>
    %3 = vector.multi_reduction <add>, %0, %cst [1] : vector<8x32xf32> to vector<8xf32>
    %4 = vector.shape_cast %3 : vector<8xf32> to vector<8x1xf32>
    %cst_5 = arith.constant 3.125000e-02 : f32
    %5 = vector.broadcast %cst_5 : f32 to vector<8x1xf32>
    %6 = arith.mulf %4, %5 : vector<8x1xf32>
    %7 = vector.broadcast %6 : vector<8x1xf32> to vector<8x32xf32>
    %8 = arith.subf %0, %7 : vector<8x32xf32>
    %9 = arith.mulf %8, %8 : vector<8x32xf32>
    %cst_6 = arith.constant dense<0.000000e+00> : vector<8xf32>
    %10 = vector.multi_reduction <add>, %9, %cst_6 [1] : vector<8x32xf32> to vector<8xf32>
    %11 = vector.shape_cast %10 : vector<8xf32> to vector<8x1xf32>
    %cst_7 = arith.constant 3.125000e-02 : f32
    %12 = vector.broadcast %cst_7 : f32 to vector<8x1xf32>
    %13 = arith.mulf %11, %12 : vector<8x1xf32>
    %cst_8 = arith.constant 9.99999974E-6 : f32
    %14 = vector.broadcast %cst_8 : f32 to vector<8x1xf32>
    %15 = arith.addf %13, %14 : vector<8x1xf32>
    %16 = math.rsqrt %15 : vector<8x1xf32>
    %17 = vector.broadcast %16 : vector<8x1xf32> to vector<8x32xf32>
    %18 = arith.mulf %8, %17 : vector<8x32xf32>
    %19 = vector.broadcast %1 : vector<1x32xf32> to vector<8x32xf32>
    %20 = arith.mulf %18, %19 : vector<8x32xf32>
    %21 = vector.broadcast %2 : vector<1x32xf32> to vector<8x32xf32>
    %22 = arith.addf %20, %21 : vector<8x32xf32>
    %c0_9 = arith.constant 0 : index
    %c0_10 = arith.constant 0 : index
    %23 = vector.load %arg4[%c0_9, %c0_10] : memref<32x64xf32, #tpu.memory_space<vmem>>, vector<32x64xf32>
    %c0_11 = arith.constant 0 : index
    %c0_12 = arith.constant 0 : index
    %24 = vector.load %arg5[%c0_11, %c0_12] : memref<1x64xf32, #tpu.memory_space<vmem>>, vector<1x64xf32>
    %c0_13 = arith.constant 0 : index
    %c0_14 = arith.constant 0 : index
    %25 = vector.load %arg6[%c0_13, %c0_14] : memref<64x32xf32, #tpu.memory_space<vmem>>, vector<64x32xf32>
    %cst_15 = arith.constant dense<0.000000e+00> : vector<8x64xf32>
    %26 = tpu.matmul %22, %23, %cst_15 {dimension_numbers = #tpu.dot_dimension_numbers<[1], [0], [0], [1], [0, 0, 1, 1], [], []>} : vector<8x32xf32>, vector<32x64xf32>, vector<8x64xf32> -> vector<8x64xf32>
    %27 = vector.broadcast %24 : vector<1x64xf32> to vector<8x64xf32>
    %28 = arith.addf %26, %27 : vector<8x64xf32>
    %cst_16 = arith.constant 0.000000e+00 : f32
    %29 = vector.broadcast %cst_16 : f32 to vector<8x64xf32>
    %30 = arith.maximumf %28, %29 : vector<8x64xf32>
    %cst_17 = arith.constant dense<0.000000e+00> : vector<8x32xf32>
    %31 = tpu.matmul %30, %25, %cst_17 {dimension_numbers = #tpu.dot_dimension_numbers<[1], [0], [0], [1], [0, 0, 1, 1], [], []>} : vector<8x64xf32>, vector<64x32xf32>, vector<8x32xf32> -> vector<8x32xf32>
    %32 = arith.addf %0, %31 : vector<8x32xf32>
    %c0_18 = arith.constant 0 : index
    %c0_19 = arith.constant 0 : index
    %33 = vector.load %arg7[%c0_18, %c0_19] : memref<8x32xf32, #tpu.memory_space<vmem>>, vector<8x32xf32>
    tpu.vector_store %arg7[%c0_18, %c0_19], %32 {strides = array<i32>} : memref<8x32xf32, #tpu.memory_space<vmem>>, vector<8x32xf32>,
    return
  }
  func.func @transform_0(%arg0: i32) -> (i32, i32) {
    %c0_i32 = arith.constant 0 : i32
    %c0_i32_0 = arith.constant 0 : i32
    return %arg0, %c0_i32 : i32, i32
  }
  func.func @transform_1(%arg0: i32) -> (i32, i32) {
    %c0_i32 = arith.constant 0 : i32
    %c0_i32_0 = arith.constant 0 : i32
    %c0_i32_1 = arith.constant 0 : i32
    return %c0_i32, %c0_i32_0 : i32, i32
  }
  func.func @transform_2(%arg0: i32) -> (i32, i32) {
    %c0_i32 = arith.constant 0 : i32
    %c0_i32_0 = arith.constant 0 : i32
    %c0_i32_1 = arith.constant 0 : i32
    return %c0_i32, %c0_i32_0 : i32, i32
  }
  func.func @transform_3(%arg0: i32) -> (i32, i32) {
    %c0_i32 = arith.constant 0 : i32
    %c0_i32_0 = arith.constant 0 : i32
    %c0_i32_1 = arith.constant 0 : i32
    return %c0_i32, %c0_i32_0 : i32, i32
  }
  func.func @transform_4(%arg0: i32) -> (i32, i32) {
    %c0_i32 = arith.constant 0 : i32
    %c0_i32_0 = arith.constant 0 : i32
    %c0_i32_1 = arith.constant 0 : i32
    return %c0_i32, %c0_i32_0 : i32, i32
  }
  func.func @transform_5(%arg0: i32) -> (i32, i32) {
    %c0_i32 = arith.constant 0 : i32
    %c0_i32_0 = arith.constant 0 : i32
    %c0_i32_1 = arith.constant 0 : i32
    return %c0_i32, %c0_i32_0 : i32, i32
  }
  func.func @transform_6(%arg0: i32) -> (i32, i32) {
    %c0_i32 = arith.constant 0 : i32
    %c0_i32_0 = arith.constant 0 : i32
    return %arg0, %c0_i32 : i32, i32
  }
}

module attributes {stable_mosaic.version = 11 : i64} {
  func.func @_ffb_prenorm_kernel(%arg0: i32, %arg1: memref<8x32xf32, #tpu.memory_space<vmem>>, %arg2: memref<1x32xf32, #tpu.memory_space<vmem>>, %arg3: memref<1x32xf32, #tpu.memory_space<vmem>>, %arg4: memref<32x64xf32, #tpu.memory_space<vmem>>, %arg5: memref<1x64xf32, #tpu.memory_space<vmem>>, %arg6: memref<64x32xf32, #tpu.memory_space<vmem>>, %arg7: memref<8x32xf32, #tpu.memory_space<vmem>>) attributes {dimension_semantics = [#tpu.dimension_semantics<parallel>], iteration_bounds = array<i64: 2>, scalar_prefetch = 0 : i64, scratch_operands = 0 : i64, tpu.core_type = #tpu.core_type<tc>, window_params = [{transform_indices = @transform_0, window_bounds = array<i64: 8, 32>}, {pipeline_mode = #tpu.pipeline_mode<synchronous>, transform_indices = @transform_1, window_bounds = array<i64: 1, 32>}, {pipeline_mode = #tpu.pipeline_mode<synchronous>, transform_indices = @transform_2, window_bounds = array<i64: 1, 32>}, {pipeline_mode = #tpu.pipeline_mode<synchronous>, transform_indices = @transform_3, window_bounds = array<i64: 32, 64>}, {pipeline_mode = #tpu.pipeline_mode<synchronous>, transform_indices = @transform_4, window_bounds = array<i64: 1, 64>}, {pipeline_mode = #tpu.pipeline_mode<synchronous>, transform_indices = @transform_5, window_bounds = array<i64: 64, 32>}, {transform_indices = @transform_6, window_bounds = array<i64: 8, 32>}]} {
    %c0 = arith.constant 0 : index
    %c0_0 = arith.constant 0 : index
    %0 = vector.load %arg1[%c0, %c0_0] : memref<8x32xf32, #tpu.memory_space<vmem>>, vector<8x32xf32>
    %c0_1 = arith.constant 0 : index
    %c0_2 = arith.constant 0 : index
    %1 = vector.load %arg2[%c0_1, %c0_2] : memref<1x32xf32, #tpu.memory_space<vmem>>, vector<1x32xf32>
    %c0_3 = arith.constant 0 : index
    %c0_4 = arith.constant 0 : index
    %2 = vector.load %arg3[%c0_3, %c0_4] : memref<1x32xf32, #tpu.memory_space<vmem>>, vector<1x32xf32>
    %cst = arith.constant dense<0.000000e+00> : vector<8xf32>
    %3 = vector.multi_reduction <add>, %0, %cst [1] : vector<8x32xf32> to vector<8xf32>
    %4 = vector.shape_cast %3 : vector<8xf32> to vector<8x1xf32>
    %cst_5 = arith.constant 3.125000e-02 : f32
    %5 = vector.broadcast %cst_5 : f32 to vector<8x1xf32>
    %6 = arith.mulf %4, %5 : vector<8x1xf32>
    %7 = vector.broadcast %6 : vector<8x1xf32> to vector<8x32xf32>
    %8 = arith.subf %0, %7 : vector<8x32xf32>
    %9 = arith.mulf %8, %8 : vector<8x32xf32>
    %cst_6 = arith.constant dense<0.000000e+00> : vector<8xf32>
    %10 = vector.multi_reduction <add>, %9, %cst_6 [1] : vector<8x32xf32> to vector<8xf32>
    %11 = vector.shape_cast %10 : vector<8xf32> to vector<8x1xf32>
    %cst_7 = arith.constant 3.125000e-02 : f32
    %12 = vector.broadcast %cst_7 : f32 to vector<8x1xf32>
    %13 = arith.mulf %11, %12 : vector<8x1xf32>
    %cst_8 = arith.constant 9.99999974E-6 : f32
    %14 = vector.broadcast %cst_8 : f32 to vector<8x1xf32>
    %15 = arith.addf %13, %14 : vector<8x1xf32>
    %16 = math.rsqrt %15 : vector<8x1xf32>
    %17 = vector.broadcast %16 : vector<8x1xf32> to vector<8x32xf32>
    %18 = arith.mulf %8, %17 : vector<8x32xf32>
    %19 = vector.broadcast %1 : vector<1x32xf32> to vector<8x32xf32>
    %20 = arith.mulf %18, %19 : vector<8x32xf32>
    %21 = vector.broadcast %2 : vector<1x32xf32> to vector<8x32xf32>
    %22 = arith.addf %20, %21 : vector<8x32xf32>
    %c0_9 = arith.constant 0 : index
    %c0_10 = arith.constant 0 : index
    %23 = vector.load %arg4[%c0_9, %c0_10] : memref<32x64xf32, #tpu.memory_space<vmem>>, vector<32x64xf32>
    %c0_11 = arith.constant 0 : index
    %c0_12 = arith.constant 0 : index
    %24 = vector.load %arg5[%c0_11, %c0_12] : memref<1x64xf32, #tpu.memory_space<vmem>>, vector<1x64xf32>
    %c0_13 = arith.constant 0 : index
    %c0_14 = arith.constant 0 : index
    %25 = vector.load %arg6[%c0_13, %c0_14] : memref<64x32xf32, #tpu.memory_space<vmem>>, vector<64x32xf32>
    %cst_15 = arith.constant dense<0.000000e+00> : vector<8x64xf32>
    %26 = tpu.matmul %22, %23, %cst_15 {dimension_numbers = #tpu.dot_dimension_numbers<[1], [0], [0], [1], [0, 0, 1, 1], [], []>} : vector<8x32xf32>, vector<32x64xf32>, vector<8x64xf32> -> vector<8x64xf32>
    %27 = vector.broadcast %24 : vector<1x64xf32> to vector<8x64xf32>
    %28 = arith.addf %26, %27 : vector<8x64xf32>
    %cst_16 = arith.constant 0.000000e+00 : f32
    %29 = vector.broadcast %cst_16 : f32 to vector<8x64xf32>
    %30 = arith.maximumf %28, %29 : vector<8x64xf32>
    %cst_17 = arith.constant dense<0.000000e+00> : vector<8x32xf32>
    %31 = tpu.matmul %30, %25, %cst_17 {dimension_numbers = #tpu.dot_dimension_numbers<[1], [0], [0], [1], [0, 0, 1, 1], [], []>} : vector<8x64xf32>, vector<64x32xf32>, vector<8x32xf32> -> vector<8x32xf32>
    %32 = arith.addf %0, %31 : vector<8x32xf32>
    %c0_18 = arith.constant 0 : index
    %c0_19 = arith.constant 0 : index
    %33 = vector.load %arg7[%c0_18, %c0_19] : memref<8x32xf32, #tpu.memory_space<vmem>>, vector<8x32xf32>
    tpu.vector_store %arg7[%c0_18, %c0_19], %32 {strides = array<i32>} : memref<8x32xf32, #tpu.memory_space<vmem>>, vector<8x32xf32>,
    return
  }
  func.func @transform_0(%arg0: i32) -> (i32, i32) {
    %c0_i32 = arith.constant 0 : i32
    %c0_i32_0 = arith.constant 0 : i32
    return %arg0, %c0_i32 : i32, i32
  }
  func.func @transform_1(%arg0: i32) -> (i32, i32) {
    %c0_i32 = arith.constant 0 : i32
    %c0_i32_0 = arith.constant 0 : i32
    %c0_i32_1 = arith.constant 0 : i32
    return %c0_i32, %c0_i32_0 : i32, i32
  }
  func.func @transform_2(%arg0: i32) -> (i32, i32) {
    %c0_i32 = arith.constant 0 : i32
    %c0_i32_0 = arith.constant 0 : i32
    %c0_i32_1 = arith.constant 0 : i32
    return %c0_i32, %c0_i32_0 : i32, i32
  }
  func.func @transform_3(%arg0: i32) -> (i32, i32) {
    %c0_i32 = arith.constant 0 : i32
    %c0_i32_0 = arith.constant 0 : i32
    %c0_i32_1 = arith.constant 0 : i32
    return %c0_i32, %c0_i32_0 : i32, i32
  }
  func.func @transform_4(%arg0: i32) -> (i32, i32) {
    %c0_i32 = arith.constant 0 : i32
    %c0_i32_0 = arith.constant 0 : i32
    %c0_i32_1 = arith.constant 0 : i32
    return %c0_i32, %c0_i32_0 : i32, i32
  }
  func.func @transform_5(%arg0: i32) -> (i32, i32) {
    %c0_i32 = arith.constant 0 : i32
    %c0_i32_0 = arith.constant 0 : i32
    %c0_i32_1 = arith.constant 0 : i32
    return %c0_i32, %c0_i32_0 : i32, i32
  }
  func.func @transform_6(%arg0: i32) -> (i32, i32) {
    %c0_i32 = arith.constant 0 : i32
    %c0_i32_0 = arith.constant 0 : i32
    return %arg0, %c0_i32 : i32, i32
  }
}

</mosaic_0001>

<bundles_post_ra>
// kernel: tpu_custom_call.1
= control target key start
LH: loop header
LB: loop body
LE: loop exit
PB: predicated region body
PF: predicated region fallthrough
CT: control target
= control target key end

     0   :  { %11 = vsyncpa [#allocation3], 0  ;;  %s716_s0 = inlined_call_operand.vmem [shape: f32[16,32], index: 0, kind: input, shape index: {}]   ;;  %s717_s1 = inlined_call_operand.vmem [shape: f32[1,32], index: 1, kind: input, shape index: {}]   ;;  %s718_s2 = inlined_call_operand.vmem [shape: f32[1,32], index: 2, kind: input, shape index: {}]   ;;  %s719_s3 = inlined_call_operand.vmem [shape: f32[32,64], index: 3, kind: input, shape index: {}]   ;;  %s720_s4 = inlined_call_operand.vmem [shape: f32[1,64], index: 4, kind: input, shape index: {}]   ;;  %s721_s5 = inlined_call_operand.vmem [shape: f32[64,32], index: 5, kind: input, shape index: {}]   ;;  %s722_s6 = inlined_call_operand.hbm [shape: f32[16,32], index: 6, kind: output, shape index: {}]  }
   0x1   :  { %13 = vsyncpa [#allocation3 + $0x1], 0  ;;  %s577_s21 = smov 0   ;;  %s579_s22 = smov 0  }
   0x2   :  { %s581_s23 = smov 0   ;;  %s583_s24 = smov 0  }
   0x3 LB: > { %s598_s25 = sadd.s32 4294967295, %s540_s24   ;;  %s422_s26 = sadd.s32 4294967294, %s540_s24   ;;  %s540_s24 = sphi %s583_s24, %s728_s24   ;;  %s536_s23 = sphi %s581_s23, %s727_s23   ;;  %s532_s22 = sphi %s579_s22, %s726_s22   ;;  %s528_s21 = sphi %s577_s21, %s725_s21  }
   0x4   : > { %s602_s27 = sadd.s32 1, %s540_s24   ;;  %s157_s28 = sadd.s32 1, %s536_s23 }
   0x5   : > { %s154_s29 = ssub.s32 %s540_s24, %s602_s27  ;;  %p167_p0 = scmp.ne.s32.totalorder %s536_s23, %s532_s22 }
   0x6   : > { %p155_p1 = scmp.eq.s32.totalorder %s154_s29, 0  ;;  %p168_p2 = scmp.eq.s32.totalorder %s598_s25, 1 }
   0x7   : > { %p173_p3 = scmp.ne.s32.totalorder %s532_s22, %s528_s21  ;;  %p174_p4 = scmp.eq.s32.totalorder %s422_s26, 1 }
   0x8   : > { %s613_s30 = scalar_select %p155_p1, %s536_s23, %s157_s28  }
   0x9   : > { %p615_p5 = por %p168_p2, %p167_p0  ;;  %p619_p6 = por %p174_p4, %p173_p3 }
   0xa   : > { %p425_p7 = scmp.ge.s32.totalorder %s540_s24, 1  ;;  %p214_p8 = scmp.lt.s32.totalorder %s540_s24, 3 }
   0xc   : > { %p215_p9 = pnand %p425_p7, %p214_p8 }
   0xd   : > { %p243_p10 = scmp.lt.s32.totalorder (!%p215_p9), %s598_s25, 1  ;;  %s240_s14 = sand.u32 (!%p215_p9), 1, %s532_s22  }
   0xe   : > { %218 = sbr.rel (%p215_p9) target bundleno = 553 (0x229), region = 44  ;;  %s426_s15 = sshll.u32 (!%p215_p9), %s240_s14, 3 }
   0xf   : > { %s431_s16 = sshll.u32 (!%p215_p9), %s598_s25, 3  ;;  %s242_s20 = scalar_lea.vmem (!%p215_p9), [#allocation2], %s426_s15 }
  0x10   : > { %s358_s19 = scalar_lea.hbm (!%p215_p9), %s722_s6, %s431_s16  ;;  %s360_s26 = sshll.u32 (!%p215_p9), %s242_s20, 4  ;;  %s361_s26 = int_to_ptr.vmem [resolvable:$true] %s360_s26 }
  0x11   : > { %s362_s28 = sshll.u32 (!%p215_p9), %s358_s19, 4  ;;  %s348_s29 = scalar_lea.sflag (!%p215_p9), [#allocation3], %s240_s14  ;;  %s363_s28 = int_to_ptr.hbm [resolvable:$true] %s362_s28 }
  0x12   : > { %s498_s12 = scalar_lea.hbm (!%p215_p9), %s722_s6, 16 }
  0x13   : > { %s244_s9 = scalar_select %p243_p10, %s598_s25, 1  ;;  %vm250_vm0 = vcmask 261120   ;;  %v284_v7 = vld [vmem:[%s719_s3 + $0x18] sm:$0xff]  ;;  %v283_v8 = vld [vmem:[%s719_s3 + $0x10] sm:$0xff]  ;;  %v282_v9 = vld [vmem:[%s719_s3 + $0x8] sm:$0xff]  ;;  %vm321_vm4 = vcmask 523264  }
  0x14   : > { %312 = vmatpush.msra.mxu0 %v284_v7  ;;  %v281_v10 = vld [vmem:[%s719_s3] sm:$0xff]  ;;  %v293_v11 = vld [vmem:[%s721_s5 + $0x38] sm:$0xff]  ;;  %v292_v12 = vld [vmem:[%s721_s5 + $0x30] sm:$0xff] }
  0x15   : > { %s427_s10 = sshll.u32 %s244_s9, 3  ;;  %333 = vmatpush.msra.mxu1 %v293_v11  ;;  %v291_v13 = vld [vmem:[%s721_s5 + $0x28] sm:$0xff]  ;;  %v290_v16 = vld [vmem:[%s721_s5 + $0x20] sm:$0xff]  ;;  %v289_v18 = vld [vmem:[%s721_s5 + $0x18] sm:$0xff]  ;;  %s492_s9 = sshra.s32 %s363_s28, 4  ;;  %s493_s9 = int_to_ptr.hbm [resolvable:$true] %s492_s9 }
  0x16   : > { %s246_s13 = scalar_lea.vmem %s716_s0, %s427_s10  ;;  %313 = vmatpush.msra.mxu0 %v283_v8  ;;  %v473_v25 = vld [vmem:[%s717_s1] ss:$0 sm:$0xff]  ;;  %v288_v31 = vld [vmem:[%s721_s5 + $0x10] sm:$0xff]  ;;  %v287_v32 = vld [vmem:[%s721_s5 + $0x8] sm:$0xff]  ;;  %s494_s10 = scalar_lea.hbm %s493_s9, 8 }
  0x17   : > { %v630_v0 = vld [vmem:[%s246_s13] sm:$0xff]  ;;  %334 = vmatpush.msra.mxu1 %v292_v12  ;;  %p495_p11 = scmp.ne.s32.totalorder %s493_s9, %s494_s10  ;;  %p499_p0 = scmp.lt.s32.totalorder %s493_s9, %s722_s6 }
  0x18   : > { %v251_v1 = vsel %vm250_vm0, %v630_v0, 0.0  ;;  %314 = vmatpush.msra.mxu0 %v282_v9  ;;  %v474_v28 = vld [vmem:[%s718_s2] ss:$0 sm:$0xff]  ;;  %p500_p1 = scmp.lt.s32.totalorder %s498_s12, %s494_s10 }
  0x19   : > { %252 = vadd.xlane.f32.xlu0 %v251_v1  ;;  %335 = vmatpush.msra.mxu1 %v291_v13  ;;  %v286_v33 = vld [vmem:[%s721_s5] sm:$0xff]  ;;  %p496_p12 = pnand %p495_p11, %p615_p5 }
  0x1a   : > { %315 = vmatpush.msra.mxu0 %v281_v10  ;;  %v475_v34 = vld [vmem:[%s720_s4] ss:$0 sm:$0xff]  ;;  %p501_p2 = por %p500_p1, %p499_p0 }
  0x1b   : > { %336 = vmatpush.msra.mxu1 %v290_v16  ;;  %p497_p13 = pneg %p496_p12 }
  0x1d   : > { %337 = vmatpush.msra.mxu1 %v289_v18  ;;  %p502_p3 = pnand %p501_p2, %p497_p13 }
  0x1f   : > { %338 = vmatpush.msra.mxu1 %v288_v31 }
  0x21   : > { %339 = vmatpush.msra.mxu1 %v287_v32 }
  0x23   : > { %340 = vmatpush.msra.mxu1 %v286_v33 }
  0x8c   : > { %v253_v2 = vpop.xlane.xlu0 %252 }
  0x8d   : > { %v254_v3 = vmul.f32 0.03125, %v253_v2 }
  0x8f   : > { %v255_v4 = vsub.f32 %v630_v0, %v254_v3 }
  0x91   : > { %v256_v5 = vmul.f32 %v255_v4, %v255_v4 }
  0x93   : > { %v257_v6 = vsel %vm250_vm0, %v256_v5, 0.0 }
  0x94   : > { %258 = vadd.xlane.f32.xlu0 %v257_v6 }
 0x107   : > { %v259_v14 = vpop.xlane.xlu0 %258 }
 0x108   : > { %v260_v15 = vmul.f32 0.03125, %v259_v14 }
 0x10a   : > { %v261_v17 = vadd.f32 1e-05, %v260_v15 }
 0x10c   : > { %476 = vrsqrt.f32 %v261_v17  ;;  %vm268_vm2 = vweird.f32 %v261_v17 }
 0x112   : > { %v477_v19 = vpop.eup %476 }
 0x113   : > { %v263_v20 = vmul.f32 %v477_v19, %v261_v17  ;;  %vm269_vm1 = vweird.f32 %v477_v19 }
 0x114   : > { %vm270_vm3 = vmor %vm268_vm2, %vm269_vm1 }
 0x115   : > { %v264_v21 = vmul.f32 %v477_v19, %v263_v20 }
 0x117   : > { %v265_v22 = vmul.f32 0.5, %v264_v21 }
 0x119   : > { %v266_v23 = vsub.f32 1.5, %v265_v22 }
 0x11b   : > { %v267_v24 = vmul.f32 %v477_v19, %v266_v23 }
 0x11d   : > { %v271_v26 = vsel %vm270_vm3, %v477_v19, %v267_v24 }
 0x11e   : > { %v272_v27 = vmul.f32 %v271_v26, %v255_v4 }
 0x120   : > { %v276_v29 = vmul.f32 %v473_v25, %v272_v27 }
 0x122   : > { %v280_v30 = vadd.f32 %v474_v28, %v276_v29 }
 0x124   : > { %428 = vmatmul.msk.f32.vlgmr.msra.gmra.mxu0 %vm250_vm0, %v280_v30 }
 0x1a1   : > { %v317_v35 = vpop.f32.mrf.mxu0 }
 0x1a2   : > { %v318_v36 = vadd.f32 %v475_v34, %v317_v35 }
 0x1a4   : > { %v320_v37 = vmax.f32 %v318_v36, 0.0 }
 0x1a6   : > { %429 = vmatmul.msk.f32.vlgmr.msra.gmra.mxu1 %vm321_vm4, %v320_v37 }
 0x223   : > { %v342_v38 = vpop.f32.mrf.mxu1 }
 0x224   : > { %v345_v39 = vadd.f32 %v342_v38, %v630_v0 }
 0x226   : > { %346 = vst.msk [vmem:[%s242_s20] sm:$0xff] %vm250_vm0, %v345_v39 }
 0x227   : > { %505 = shalt.err (!%p502_p3)
}
 0x228   : > { %434 = dma.vmem_to_hbm [thread:$0]  (%p615_p5), %s361_s26, 128, %s363_s28, %s348_s29  }
 0x229 PF: > { %p440_p4 = scmp.ge.s32.totalorder %s540_s24, 2  ;;  %s374_s14 = sand.u32 1, %s528_s21  }
 0x22a   : > { %s375_s16 = scalar_lea.sflag [#allocation3], %s374_s14 }
 0x22b   : > { %p437_p7 = pnand %p440_p4, %p619_p6 }
 0x22d   : > { %p438_p8 = pneg %p437_p7 }
 0x22f   : > { %523 = dma.done.wait (%p438_p8), %s375_s16, 128  }
 0x230   : > { %525 = vsyncadd (%p438_p8), %s375_s16, 4294967168  ;;  %p16_p9 = scmp.ge.s32.totalorder %s602_s27, 4   ;;  %s725_s21 = smov %s532_s22 }
 0x231   : > { %s726_s22 = smov %s536_s23  ;;  %s727_s23 = smov %s613_s30 }
 0x232   : > { %s728_s24 = smov %s602_s27  ;;  %18 = sbr.rel (!%p16_p9) target bundleno = 3 (0x3), region = 79 }
 0x237   :  { %381 = vsyncpa [#allocation3], 1 }
 0x238   :  { %383 = vsyncpa [#allocation3 + $0x1], 1 }

// kernel: tpu_custom_call.1
= control target key start
LH: loop header
LB: loop body
LE: loop exit
PB: predicated region body
PF: predicated region fallthrough
CT: control target
= control target key end

     0   :  { %11 = vsyncpa [#allocation3], 0  ;;  %s716_s0 = inlined_call_operand.vmem [shape: f32[16,32], index: 0, kind: input, shape index: {}]   ;;  %s717_s1 = inlined_call_operand.vmem [shape: f32[1,32], index: 1, kind: input, shape index: {}]   ;;  %s718_s2 = inlined_call_operand.vmem [shape: f32[1,32], index: 2, kind: input, shape index: {}]   ;;  %s719_s3 = inlined_call_operand.vmem [shape: f32[32,64], index: 3, kind: input, shape index: {}]   ;;  %s720_s4 = inlined_call_operand.vmem [shape: f32[1,64], index: 4, kind: input, shape index: {}]   ;;  %s721_s5 = inlined_call_operand.vmem [shape: f32[64,32], index: 5, kind: input, shape index: {}]   ;;  %s722_s6 = inlined_call_operand.hbm [shape: f32[16,32], index: 6, kind: output, shape index: {}]  }
   0x1   :  { %13 = vsyncpa [#allocation3 + $0x1], 0  ;;  %s577_s21 = smov 0   ;;  %s579_s22 = smov 0  }
   0x2   :  { %s581_s23 = smov 0   ;;  %s583_s24 = smov 0  }
   0x3 LB: > { %s598_s25 = sadd.s32 4294967295, %s540_s24   ;;  %s422_s26 = sadd.s32 4294967294, %s540_s24   ;;  %s540_s24 = sphi %s583_s24, %s728_s24   ;;  %s536_s23 = sphi %s581_s23, %s727_s23   ;;  %s532_s22 = sphi %s579_s22, %s726_s22   ;;  %s528_s21 = sphi %s577_s21, %s725_s21  }
   0x4   : > { %s602_s27 = sadd.s32 1, %s540_s24   ;;  %s157_s28 = sadd.s32 1, %s536_s23 }
   0x5   : > { %s154_s29 = ssub.s32 %s540_s24, %s602_s27  ;;  %p167_p0 = scmp.ne.s32.totalorder %s536_s23, %s532_s22 }
   0x6   : > { %p155_p1 = scmp.eq.s32.totalorder %s154_s29, 0  ;;  %p168_p2 = scmp.eq.s32.totalorder %s598_s25, 1 }
   0x7   : > { %p173_p3 = scmp.ne.s32.totalorder %s532_s22, %s528_s21  ;;  %p174_p4 = scmp.eq.s32.totalorder %s422_s26, 1 }
   0x8   : > { %s613_s30 = scalar_select %p155_p1, %s536_s23, %s157_s28  }
   0x9   : > { %p615_p5 = por %p168_p2, %p167_p0  ;;  %p619_p6 = por %p174_p4, %p173_p3 }
   0xa   : > { %p425_p7 = scmp.ge.s32.totalorder %s540_s24, 1  ;;  %p214_p8 = scmp.lt.s32.totalorder %s540_s24, 3 }
   0xc   : > { %p215_p9 = pnand %p425_p7, %p214_p8 }
   0xd   : > { %p243_p10 = scmp.lt.s32.totalorder (!%p215_p9), %s598_s25, 1  ;;  %s240_s14 = sand.u32 (!%p215_p9), 1, %s532_s22  }
   0xe   : > { %218 = sbr.rel (%p215_p9) target bundleno = 553 (0x229), region = 44  ;;  %s426_s15 = sshll.u32 (!%p215_p9), %s240_s14, 3 }
   0xf   : > { %s431_s16 = sshll.u32 (!%p215_p9), %s598_s25, 3  ;;  %s242_s20 = scalar_lea.vmem (!%p215_p9), [#allocation2], %s426_s15 }
  0x10   : > { %s358_s19 = scalar_lea.hbm (!%p215_p9), %s722_s6, %s431_s16  ;;  %s360_s26 = sshll.u32 (!%p215_p9), %s242_s20, 4  ;;  %s361_s26 = int_to_ptr.vmem [resolvable:$true] %s360_s26 }
  0x11   : > { %s362_s28 = sshll.u32 (!%p215_p9), %s358_s19, 4  ;;  %s348_s29 = scalar_lea.sflag (!%p215_p9), [#allocation3], %s240_s14  ;;  %s363_s28 = int_to_ptr.hbm [resolvable:$true] %s362_s28 }
  0x12   : > { %s498_s12 = scalar_lea.hbm (!%p215_p9), %s722_s6, 16 }
  0x13   : > { %s244_s9 = scalar_select %p243_p10, %s598_s25, 1  ;;  %vm250_vm0 = vcmask 261120   ;;  %v284_v7 = vld [vmem:[%s719_s3 + $0x18] sm:$0xff]  ;;  %v283_v8 = vld [vmem:[%s719_s3 + $0x10] sm:$0xff]  ;;  %v282_v9 = vld [vmem:[%s719_s3 + $0x8] sm:$0xff]  ;;  %vm321_vm4 = vcmask 523264  }
  0x14   : > { %312 = vmatpush.msra.mxu0 %v284_v7  ;;  %v281_v10 = vld [vmem:[%s719_s3] sm:$0xff]  ;;  %v293_v11 = vld [vmem:[%s721_s5 + $0x38] sm:$0xff]  ;;  %v292_v12 = vld [vmem:[%s721_s5 + $0x30] sm:$0xff] }
  0x15   : > { %s427_s10 = sshll.u32 %s244_s9, 3  ;;  %333 = vmatpush.msra.mxu1 %v293_v11  ;;  %v291_v13 = vld [vmem:[%s721_s5 + $0x28] sm:$0xff]  ;;  %v290_v16 = vld [vmem:[%s721_s5 + $0x20] sm:$0xff]  ;;  %v289_v18 = vld [vmem:[%s721_s5 + $0x18] sm:$0xff]  ;;  %s492_s9 = sshra.s32 %s363_s28, 4  ;;  %s493_s9 = int_to_ptr.hbm [resolvable:$true] %s492_s9 }
  0x16   : > { %s246_s13 = scalar_lea.vmem %s716_s0, %s427_s10  ;;  %313 = vmatpush.msra.mxu0 %v283_v8  ;;  %v473_v25 = vld [vmem:[%s717_s1] ss:$0 sm:$0xff]  ;;  %v288_v31 = vld [vmem:[%s721_s5 + $0x10] sm:$0xff]  ;;  %v287_v32 = vld [vmem:[%s721_s5 + $0x8] sm:$0xff]  ;;  %s494_s10 = scalar_lea.hbm %s493_s9, 8 }
  0x17   : > { %v630_v0 = vld [vmem:[%s246_s13] sm:$0xff]  ;;  %334 = vmatpush.msra.mxu1 %v292_v12  ;;  %p495_p11 = scmp.ne.s32.totalorder %s493_s9, %s494_s10  ;;  %p499_p0 = scmp.lt.s32.totalorder %s493_s9, %s722_s6 }
  0x18   : > { %v251_v1 = vsel %vm250_vm0, %v630_v0, 0.0  ;;  %314 = vmatpush.msra.mxu0 %v282_v9  ;;  %v474_v28 = vld [vmem:[%s718_s2] ss:$0 sm:$0xff]  ;;  %p500_p1 = scmp.lt.s32.totalorder %s498_s12, %s494_s10 }
  0x19   : > { %252 = vadd.xlane.f32.xlu0 %v251_v1  ;;  %335 = vmatpush.msra.mxu1 %v291_v13  ;;  %v286_v33 = vld [vmem:[%s721_s5] sm:$0xff]  ;;  %p496_p12 = pnand %p495_p11, %p615_p5 }
  0x1a   : > { %315 = vmatpush.msra.mxu0 %v281_v10  ;;  %v475_v34 = vld [vmem:[%s720_s4] ss:$0 sm:$0xff]  ;;  %p501_p2 = por %p500_p1, %p499_p0 }
  0x1b   : > { %336 = vmatpush.msra.mxu1 %v290_v16  ;;  %p497_p13 = pneg %p496_p12 }
  0x1d   : > { %337 = vmatpush.msra.mxu1 %v289_v18  ;;  %p502_p3 = pnand %p501_p2, %p497_p13 }
  0x1f   : > { %338 = vmatpush.msra.mxu1 %v288_v31 }
  0x21   : > { %339 = vmatpush.msra.mxu1 %v287_v32 }
  0x23   : > { %340 = vmatpush.msra.mxu1 %v286_v33 }
  0x8c   : > { %v253_v2 = vpop.xlane.xlu0 %252 }
  0x8d   : > { %v254_v3 = vmul.f32 0.03125, %v253_v2 }
  0x8f   : > { %v255_v4 = vsub.f32 %v630_v0, %v254_v3 }
  0x91   : > { %v256_v5 = vmul.f32 %v255_v4, %v255_v4 }
  0x93   : > { %v257_v6 = vsel %vm250_vm0, %v256_v5, 0.0 }
  0x94   : > { %258 = vadd.xlane.f32.xlu0 %v257_v6 }
 0x107   : > { %v259_v14 = vpop.xlane.xlu0 %258 }
 0x108   : > { %v260_v15 = vmul.f32 0.03125, %v259_v14 }
 0x10a   : > { %v261_v17 = vadd.f32 1e-05, %v260_v15 }
 0x10c   : > { %476 = vrsqrt.f32 %v261_v17  ;;  %vm268_vm2 = vweird.f32 %v261_v17 }
 0x112   : > { %v477_v19 = vpop.eup %476 }
 0x113   : > { %v263_v20 = vmul.f32 %v477_v19, %v261_v17  ;;  %vm269_vm1 = vweird.f32 %v477_v19 }
 0x114   : > { %vm270_vm3 = vmor %vm268_vm2, %vm269_vm1 }
 0x115   : > { %v264_v21 = vmul.f32 %v477_v19, %v263_v20 }
 0x117   : > { %v265_v22 = vmul.f32 0.5, %v264_v21 }
 0x119   : > { %v266_v23 = vsub.f32 1.5, %v265_v22 }
 0x11b   : > { %v267_v24 = vmul.f32 %v477_v19, %v266_v23 }
 0x11d   : > { %v271_v26 = vsel %vm270_vm3, %v477_v19, %v267_v24 }
 0x11e   : > { %v272_v27 = vmul.f32 %v271_v26, %v255_v4 }
 0x120   : > { %v276_v29 = vmul.f32 %v473_v25, %v272_v27 }
 0x122   : > { %v280_v30 = vadd.f32 %v474_v28, %v276_v29 }
 0x124   : > { %428 = vmatmul.msk.f32.vlgmr.msra.gmra.mxu0 %vm250_vm0, %v280_v30 }
 0x1a1   : > { %v317_v35 = vpop.f32.mrf.mxu0 }
 0x1a2   : > { %v318_v36 = vadd.f32 %v475_v34, %v317_v35 }
 0x1a4   : > { %v320_v37 = vmax.f32 %v318_v36, 0.0 }
 0x1a6   : > { %429 = vmatmul.msk.f32.vlgmr.msra.gmra.mxu1 %vm321_vm4, %v320_v37 }
 0x223   : > { %v342_v38 = vpop.f32.mrf.mxu1 }
 0x224   : > { %v345_v39 = vadd.f32 %v342_v38, %v630_v0 }
 0x226   : > { %346 = vst.msk [vmem:[%s242_s20] sm:$0xff] %vm250_vm0, %v345_v39 }
 0x227   : > { %505 = shalt.err (!%p502_p3)
}
 0x228   : > { %434 = dma.vmem_to_hbm [thread:$0]  (%p615_p5), %s361_s26, 128, %s363_s28, %s348_s29  }
 0x229 PF: > { %p440_p4 = scmp.ge.s32.totalorder %s540_s24, 2  ;;  %s374_s14 = sand.u32 1, %s528_s21  }
 0x22a   : > { %s375_s16 = scalar_lea.sflag [#allocation3], %s374_s14 }
 0x22b   : > { %p437_p7 = pnand %p440_p4, %p619_p6 }
 0x22d   : > { %p438_p8 = pneg %p437_p7 }
 0x22f   : > { %523 = dma.done.wait (%p438_p8), %s375_s16, 128  }
 0x230   : > { %525 = vsyncadd (%p438_p8), %s375_s16, 4294967168  ;;  %p16_p9 = scmp.ge.s32.totalorder %s602_s27, 4   ;;  %s725_s21 = smov %s532_s22 }
 0x231   : > { %s726_s22 = smov %s536_s23  ;;  %s727_s23 = smov %s613_s30 }
 0x232   : > { %s728_s24 = smov %s602_s27  ;;  %18 = sbr.rel (!%p16_p9) target bundleno = 3 (0x3), region = 79 }
 0x237   :  { %381 = vsyncpa [#allocation3], 1 }
 0x238   :  { %383 = vsyncpa [#allocation3 + $0x1], 1 }

</bundles_post_ra>
